<compile_context>
chip_gen: v7x
topology: tpu7x:2x2x1
jax: 0.10.0
libtpu: 0.0.40
codegen_flags: <defaults>
</compile_context>

<pallas_src>
import jax
import jax.numpy as jnp
from jax.experimental import pallas as pl
from jax.experimental.pallas import tpu as pltpu

EPS = 1e-5
LEAKY_SLOPE = 0.1


def _make_inception_kernel(C4, inv_cnt):
    """Builds the fused Inception_block kernel.

    C4      : inplanes // 4 (channels of every branch)
    inv_cnt : 1.0 / (N * L)  -- reciprocal of the number of valid (data) columns
    """

    def conv_bn_lrelu(x, w_cat, gamma, beta, mask, K):
        # x      : (C_in, M)  padded layout (per-sample pad columns are zero)
        # w_cat  : (C_out, K*C_in), block k == W[:, :, k]
        # gamma  : (C_out, 1)   beta : (C_out, 1)
        # mask   : (1, M) 1.0 at data columns, 0.0 at pad columns
        M = x.shape[1]
        p = (K - 1) // 2
        Mc = M - 2 * p
        if K == 1:
            x_cat = x
            mask_c = mask
        else:
            # in-VMEM im2col: K shifted lane slices stacked along channels.
            x_cat = jnp.concatenate([x[:, k:k + Mc] for k in range(K)], axis=0)
            mask_c = mask[:, p:p + Mc]

        # Conv1d as a single MXU matmul.  Conv bias omitted: it is exactly
        # cancelled by the train-mode BatchNorm mean subtraction below.
        z = jnp.dot(w_cat, x_cat, preferred_element_type=jnp.float32)  # (C_out, Mc)

        # BatchNorm1d (train mode): biased per-channel stats over the N*L
        # valid columns only (pad columns masked out of the reduction).
        mean = jnp.sum(z * mask_c, axis=1, keepdims=True) * inv_cnt
        d = z - mean
        var = jnp.sum(d * d * mask_c, axis=1, keepdims=True) * inv_cnt
        scale = jax.lax.rsqrt(var + EPS) * gamma           # fold gamma once
        y = d * scale + beta
        y = jnp.where(y >= 0.0, y, LEAKY_SLOPE * y)        # LeakyReLU(0.1)
        y = y * mask_c                                     # keep pads at zero

        if p:
            # restore full width with zero edge columns so the output chains
            # directly into the next 3x3 conv.
            zcol = jnp.zeros((y.shape[0], p), jnp.float32)
            y = jnp.concatenate([zcol, y, zcol], axis=1)
        return y

    def kernel(x_ref, mask_ref, w1_ref, g1_ref, b1_ref,
               w3_ref, g3_ref, b3_ref, o_ref):
        x = x_ref[...]
        mask = mask_ref[...]

        # Stage 1: the four same-input 1x1 conv+BN+LeakyReLU branches fused
        # into a single matmul with concatenated output channels.
        y1 = conv_bn_lrelu(x, w1_ref[...], g1_ref[...], b1_ref[...], mask, K=1)
        br1 = y1[0 * C4:1 * C4]        # branch1_1  (final for branch 1)
        x2 = y1[1 * C4:2 * C4]         # branch2_1
        x3 = y1[2 * C4:3 * C4]         # branch3_1
        x4 = y1[3 * C4:4 * C4]         # branch4_1

        def conv3(x_in, s):            # 3x3 stage s (weights pre-flattened)
            return conv_bn_lrelu(x_in, w3_ref[s], g3_ref[s], b3_ref[s], mask, K=3)

        # branch 2: one 3x3
        br2 = conv3(x2, 0)
        # branch 3: the SAME 3x3 module applied twice (as in the torch forward)
        t3 = conv3(x3, 1)
        br3 = conv3(t3, 1)
        # branch 4: three distinct 3x3 convs chained
        t4 = conv3(x4, 2)
        t4 = conv3(t4, 3)
        br4 = conv3(t4, 4)

        # channel concat (== torch.cat(..., dim=1))
        o_ref[...] = jnp.concatenate([br1, br2, br3, br4], axis=0)

    return kernel


def inception_block_forward(x, params):
    """
    x      : (N, C_in, L) float32, C_in divisible by 4.
    params : dict name -> (conv_w, conv_b, bn_gamma, bn_beta) for the layers
             branch1_1, branch2_1, branch2_2_3, branch3_1, branch3_2_3,
             branch4_1, branch4_2_3, branch4_3_3, branch4_4_3.
    returns: (N, C_in, L) float32   (4 * C_in//4 output channels)
    """
    N, C_in, L = x.shape
    C4 = C_in // 4
    Lp = L + 2
    M = N * Lp
    C_out_total = 4 * C4

    # ---- layout: (N, C_in, L) -> (C_in, N*(L+2)) with zero pad per sample ----
    xt = jnp.transpose(x, (1, 0, 2))                       # (C_in, N, L)
    xt = jnp.pad(xt, ((0, 0), (0, 0), (1, 1)))             # (C_in, N, Lp)
    x2d = xt.reshape(C_in, M).astype(jnp.float32)

    # validity mask: 1 at data columns, 0 at per-sample pad columns
    mask = jnp.pad(jnp.ones((1, N, L), jnp.float32),
                   ((0, 0), (0, 0), (1, 1))).reshape(1, M)

    # ---- pack parameters (conv biases intentionally dropped: cancelled by BN)
    ones_names = ["branch1_1", "branch2_1", "branch3_1", "branch4_1"]
    w1 = jnp.concatenate([params[n][0].reshape(C4, C_in) for n in ones_names],
                         axis=0)                                    # (4C4, C_in)
    g1 = jnp.concatenate([params[n][2] for n in ones_names]).reshape(C_out_total, 1)
    b1 = jnp.concatenate([params[n][3] for n in ones_names]).reshape(C_out_total, 1)

    three_names = ["branch2_2_3", "branch3_2_3", "branch4_2_3",
                   "branch4_3_3", "branch4_4_3"]

    def flat3(w):    # (C4, C4, 3) -> (C4, 3*C4); block k == w[:, :, k]
        return jnp.concatenate([w[:, :, k] for k in range(3)], axis=1)

    w3 = jnp.stack([flat3(params[n][0]) for n in three_names], axis=0)  # (5,C4,3C4)
    g3 = jnp.stack([params[n][2].reshape(C4, 1) for n in three_names], axis=0)
    b3 = jnp.stack([params[n][3].reshape(C4, 1) for n in three_names], axis=0)

    kernel = _make_inception_kernel(C4, 1.0 / float(N * L))

    out2d = pl.pallas_call(
        kernel,
        out_shape=jax.ShapeDtypeStruct((C_out_total, M), jnp.float32),
        grid=(1,),
        in_specs=[
            pl.BlockSpec((C_in, M), lambda i: (0, 0)),
            pl.BlockSpec((1, M), lambda i: (0, 0)),
            pl.BlockSpec((C_out_total, C_in), lambda i: (0, 0)),
            pl.BlockSpec((C_out_total, 1), lambda i: (0, 0)),
            pl.BlockSpec((C_out_total, 1), lambda i: (0, 0)),
            pl.BlockSpec((5, C4, 3 * C4), lambda i: (0, 0, 0)),
            pl.BlockSpec((5, C4, 1), lambda i: (0, 0, 0)),
            pl.BlockSpec((5, C4, 1), lambda i: (0, 0, 0)),
        ],
        out_specs=pl.BlockSpec((C_out_total, M), lambda i: (0, 0)),
        compiler_params=pltpu.CompilerParams(
            dimension_semantics=("arbitrary",)),
    )(x2d, mask, w1, g1, b1, w3, g3, b3)

    # back to PyTorch NCL layout: (4*C4, N*Lp) -> (N, 4*C4, L)
    out = out2d.reshape(C_out_total, N, Lp)[:, :, 1:1 + L]
    return jnp.transpose(out, (1, 0, 2))


# ----------------------------- pure-JAX reference ---------------------------

def _conv_bn_lrelu_ref(x, w, b, gamma, beta, padding):
    y = jax.lax.conv_general_dilated(
        x, w, window_strides=(1,), padding=[(padding, padding)],
        dimension_numbers=("NCW", "OIW", "NCW"))
    y = y + b.reshape(1, -1, 1)                      # conv bias kept here
    mean = jnp.mean(y, axis=(0, 2), keepdims=True)
    var = jnp.mean((y - mean) ** 2, axis=(0, 2), keepdims=True)
    z = (y - mean) * jax.lax.rsqrt(var + EPS) * gamma.reshape(1, -1, 1) \
        + beta.reshape(1, -1, 1)
    return jnp.where(z >= 0.0, z, LEAKY_SLOPE * z)


def _inception_ref(x, params):
    def cbr(xx, name, padding):
        w, b, g, be = params[name]
        return _conv_bn_lrelu_ref(xx, w, b, g, be, padding)

    br1 = cbr(x, "branch1_1", 0)
    br2 = cbr(cbr(x, "branch2_1", 0), "branch2_2_3", 1)
    t = cbr(x, "branch3_1", 0)
    t = cbr(t, "branch3_2_3", 1)
    br3 = cbr(t, "branch3_2_3", 1)                  # same module applied twice
    t = cbr(x, "branch4_1", 0)
    t = cbr(t, "branch4_2_3", 1)
    t = cbr(t, "branch4_3_3", 1)
    br4 = cbr(t, "branch4_4_3", 1)
    return jnp.concatenate([br1, br2, br3, br4], axis=1)


if __name__ == "__main__":
    N, C_in, L = 2, 8, 16          # Inception_block(inplanes=8): C4 = 2
    C4 = C_in // 4

    key = jax.random.PRNGKey(0)
    keys = iter(jax.random.split(key, 64))

    x = jax.random.normal(next(keys), (N, C_in, L), dtype=jnp.float32)

    def make_layer(c_in, c_out, k):
        fan_in = c_in * k
        bound = 1.0 / (fan_in ** 0.5)
        w = jax.random.uniform(next(keys), (c_out, c_in, k), jnp.float32,
                               -bound, bound)
        b = jax.random.uniform(next(keys), (c_out,), jnp.float32, -bound, bound)
        # non-default BN affine params so the folded gamma / beta path and the
        # bias-cancellation claim are actually exercised.
        g = jax.random.uniform(next(keys), (c_out,), jnp.float32, 0.5, 1.5)
        be = 0.1 * jax.random.normal(next(keys), (c_out,), dtype=jnp.float32)
        return (w, b, g, be)

    params = {
        "branch1_1":   make_layer(C_in, C4, 1),
        "branch2_1":   make_layer(C_in, C4, 1),
        "branch2_2_3": make_layer(C4, C4, 3),
        "branch3_1":   make_layer(C_in, C4, 1),
        "branch3_2_3": make_layer(C4, C4, 3),
        "branch4_1":   make_layer(C_in, C4, 1),
        "branch4_2_3": make_layer(C4, C4, 3),
        "branch4_3_3": make_layer(C4, C4, 3),
        "branch4_4_3": make_layer(C4, C4, 3),
    }

    out = inception_block_forward(x, params)
    out = jax.block_until_ready(out)

    ref = _inception_ref(x, params)
    assert out.shape == (N, 4 * C4, L), out.shape
    err = float(jnp.max(jnp.abs(out - ref)))
    assert jnp.allclose(out, ref, atol=5e-4, rtol=5e-4), err

    print("KERNEL_OK")
</pallas_src>

<mosaic_0001>
module attributes {stable_mosaic.version = 11 : i64} {
  func.func @kernel(%arg0: i32, %arg1: memref<8x36xf32, #tpu.memory_space<vmem>>, %arg2: memref<1x36xf32, #tpu.memory_space<vmem>>, %arg3: memref<8x8xf32, #tpu.memory_space<vmem>>, %arg4: memref<8x1xf32, #tpu.memory_space<vmem>>, %arg5: memref<8x1xf32, #tpu.memory_space<vmem>>, %arg6: memref<5x2x6xf32, #tpu.memory_space<vmem>>, %arg7: memref<5x2x1xf32, #tpu.memory_space<vmem>>, %arg8: memref<5x2x1xf32, #tpu.memory_space<vmem>>, %arg9: memref<8x36xf32, #tpu.memory_space<vmem>>) attributes {dimension_semantics = [#tpu.dimension_semantics<arbitrary>], iteration_bounds = array<i64: 1>, scalar_prefetch = 0 : i64, scratch_operands = 0 : i64, tpu.core_type = #tpu.core_type<tc>, window_params = [{pipeline_mode = #tpu.pipeline_mode<synchronous>, transform_indices = @transform_0, window_bounds = array<i64: 8, 36>}, {pipeline_mode = #tpu.pipeline_mode<synchronous>, transform_indices = @transform_1, window_bounds = array<i64: 1, 36>}, {pipeline_mode = #tpu.pipeline_mode<synchronous>, transform_indices = @transform_2, window_bounds = array<i64: 8, 8>}, {pipeline_mode = #tpu.pipeline_mode<synchronous>, transform_indices = @transform_3, window_bounds = array<i64: 8, 1>}, {pipeline_mode = #tpu.pipeline_mode<synchronous>, transform_indices = @transform_4, window_bounds = array<i64: 8, 1>}, {pipeline_mode = #tpu.pipeline_mode<synchronous>, transform_indices = @transform_5, window_bounds = array<i64: 5, 2, 6>}, {pipeline_mode = #tpu.pipeline_mode<synchronous>, transform_indices = @transform_6, window_bounds = array<i64: 5, 2, 1>}, {pipeline_mode = #tpu.pipeline_mode<synchronous>, transform_indices = @transform_7, window_bounds = array<i64: 5, 2, 1>}, {pipeline_mode = #tpu.pipeline_mode<synchronous>, transform_indices = @transform_8, window_bounds = array<i64: 8, 36>}]} {
    %c0 = arith.constant 0 : index
    %c0_0 = arith.constant 0 : index
    %0 = vector.load %arg1[%c0, %c0_0] : memref<8x36xf32, #tpu.memory_space<vmem>>, vector<8x36xf32>
    %c0_1 = arith.constant 0 : index
    %c0_2 = arith.constant 0 : index
    %1 = vector.load %arg2[%c0_1, %c0_2] : memref<1x36xf32, #tpu.memory_space<vmem>>, vector<1x36xf32>
    %c0_3 = arith.constant 0 : index
    %c0_4 = arith.constant 0 : index
    %2 = vector.load %arg3[%c0_3, %c0_4] : memref<8x8xf32, #tpu.memory_space<vmem>>, vector<8x8xf32>
    %c0_5 = arith.constant 0 : index
    %c0_6 = arith.constant 0 : index
    %3 = vector.load %arg4[%c0_5, %c0_6] : memref<8x1xf32, #tpu.memory_space<vmem>>, vector<8x1xf32>
    %c0_7 = arith.constant 0 : index
    %c0_8 = arith.constant 0 : index
    %4 = vector.load %arg5[%c0_7, %c0_8] : memref<8x1xf32, #tpu.memory_space<vmem>>, vector<8x1xf32>
    %cst = arith.constant dense<0.000000e+00> : vector<8x36xf32>
    %5 = tpu.matmul %2, %0, %cst {dimension_numbers = #tpu.dot_dimension_numbers<[1], [0], [0], [1], [0, 0, 1, 1], [], []>} : vector<8x8xf32>, vector<8x36xf32>, vector<8x36xf32> -> vector<8x36xf32>
    %6 = vector.broadcast %1 : vector<1x36xf32> to vector<8x36xf32>
    %7 = arith.mulf %5, %6 : vector<8x36xf32>
    %cst_9 = arith.constant dense<0.000000e+00> : vector<8xf32>
    %8 = vector.multi_reduction <add>, %7, %cst_9 [1] : vector<8x36xf32> to vector<8xf32>
    %9 = vector.shape_cast %8 : vector<8xf32> to vector<8x1xf32>
    %cst_10 = arith.constant 3.125000e-02 : f32
    %10 = vector.broadcast %cst_10 : f32 to vector<8x1xf32>
    %11 = arith.mulf %9, %10 : vector<8x1xf32>
    %12 = vector.broadcast %11 : vector<8x1xf32> to vector<8x36xf32>
    %13 = arith.subf %5, %12 : vector<8x36xf32>
    %14 = arith.mulf %13, %13 : vector<8x36xf32>
    %15 = vector.broadcast %1 : vector<1x36xf32> to vector<8x36xf32>
    %16 = arith.mulf %14, %15 : vector<8x36xf32>
    %cst_11 = arith.constant dense<0.000000e+00> : vector<8xf32>
    %17 = vector.multi_reduction <add>, %16, %cst_11 [1] : vector<8x36xf32> to vector<8xf32>
    %18 = vector.shape_cast %17 : vector<8xf32> to vector<8x1xf32>
    %cst_12 = arith.constant 3.125000e-02 : f32
    %19 = vector.broadcast %cst_12 : f32 to vector<8x1xf32>
    %20 = arith.mulf %18, %19 : vector<8x1xf32>
    %cst_13 = arith.constant 9.99999974E-6 : f32
    %21 = vector.broadcast %cst_13 : f32 to vector<8x1xf32>
    %22 = arith.addf %20, %21 : vector<8x1xf32>
    %23 = math.rsqrt %22 : vector<8x1xf32>
    %24 = arith.mulf %23, %3 : vector<8x1xf32>
    %25 = vector.broadcast %24 : vector<8x1xf32> to vector<8x36xf32>
    %26 = arith.mulf %13, %25 : vector<8x36xf32>
    %27 = vector.broadcast %4 : vector<8x1xf32> to vector<8x36xf32>
    %28 = arith.addf %26, %27 : vector<8x36xf32>
    %cst_14 = arith.constant 0.000000e+00 : f32
    %29 = vector.broadcast %cst_14 : f32 to vector<8x36xf32>
    %30 = arith.cmpf oge, %28, %29 : vector<8x36xf32>
    %cst_15 = arith.constant 1.000000e-01 : f32
    %31 = vector.broadcast %cst_15 : f32 to vector<8x36xf32>
    %32 = arith.mulf %31, %28 : vector<8x36xf32>
    %33 = arith.select %30, %28, %32 : vector<8x36xi1>, vector<8x36xf32>
    %34 = vector.broadcast %1 : vector<1x36xf32> to vector<8x36xf32>
    %35 = arith.mulf %33, %34 : vector<8x36xf32>
    %36 = vector.extract_strided_slice %35 {offsets = [0, 0], sizes = [2, 36], strides = [1, 1]} : vector<8x36xf32> to vector<2x36xf32>
    %37 = vector.extract_strided_slice %35 {offsets = [2, 0], sizes = [2, 36], strides = [1, 1]} : vector<8x36xf32> to vector<2x36xf32>
    %38 = vector.extract_strided_slice %35 {offsets = [4, 0], sizes = [2, 36], strides = [1, 1]} : vector<8x36xf32> to vector<2x36xf32>
    %39 = vector.extract_strided_slice %35 {offsets = [6, 0], sizes = [2, 36], strides = [1, 1]} : vector<8x36xf32> to vector<2x36xf32>
    %c0_16 = arith.constant 0 : index
    %c0_17 = arith.constant 0 : index
    %c0_18 = arith.constant 0 : index
    %40 = vector.load %arg6[%c0_16, %c0_17, %c0_18] : memref<5x2x6xf32, #tpu.memory_space<vmem>>, vector<1x2x6xf32>
    %41 = vector.shape_cast %40 : vector<1x2x6xf32> to vector<2x6xf32>
    %c0_19 = arith.constant 0 : index
    %c0_20 = arith.constant 0 : index
    %c0_21 = arith.constant 0 : index
    %42 = vector.load %arg7[%c0_19, %c0_20, %c0_21] : memref<5x2x1xf32, #tpu.memory_space<vmem>>, vector<1x2x1xf32>
    %43 = vector.shape_cast %42 : vector<1x2x1xf32> to vector<2x1xf32>
    %c0_22 = arith.constant 0 : index
    %c0_23 = arith.constant 0 : index
    %c0_24 = arith.constant 0 : index
    %44 = vector.load %arg8[%c0_22, %c0_23, %c0_24] : memref<5x2x1xf32, #tpu.memory_space<vmem>>, vector<1x2x1xf32>
    %45 = vector.shape_cast %44 : vector<1x2x1xf32> to vector<2x1xf32>
    %46 = vector.extract_strided_slice %37 {offsets = [0, 0], sizes = [2, 34], strides = [1, 1]} : vector<2x36xf32> to vector<2x34xf32>
    %47 = vector.extract_strided_slice %37 {offsets = [0, 1], sizes = [2, 34], strides = [1, 1]} : vector<2x36xf32> to vector<2x34xf32>
    %48 = vector.extract_strided_slice %37 {offsets = [0, 2], sizes = [2, 34], strides = [1, 1]} : vector<2x36xf32> to vector<2x34xf32>
    %49 = tpu.concatenate %46, %47, %48 in 0 : vector<2x34xf32>, vector<2x34xf32>, vector<2x34xf32> -> vector<6x34xf32>
    %50 = vector.extract_strided_slice %1 {offsets = [0, 1], sizes = [1, 34], strides = [1, 1]} : vector<1x36xf32> to vector<1x34xf32>
    %cst_25 = arith.constant dense<0.000000e+00> : vector<2x34xf32>
    %51 = tpu.matmul %41, %49, %cst_25 {dimension_numbers = #tpu.dot_dimension_numbers<[1], [0], [0], [1], [0, 0, 1, 1], [], []>} : vector<2x6xf32>, vector<6x34xf32>, vector<2x34xf32> -> vector<2x34xf32>
    %52 = vector.broadcast %50 : vector<1x34xf32> to vector<2x34xf32>
    %53 = arith.mulf %51, %52 : vector<2x34xf32>
    %cst_26 = arith.constant dense<0.000000e+00> : vector<2xf32>
    %54 = vector.multi_reduction <add>, %53, %cst_26 [1] : vector<2x34xf32> to vector<2xf32>
    %55 = vector.shape_cast %54 : vector<2xf32> to vector<2x1xf32>
    %cst_27 = arith.constant 3.125000e-02 : f32
    %56 = vector.broadcast %cst_27 : f32 to vector<2x1xf32>
    %57 = arith.mulf %55, %56 : vector<2x1xf32>
    %58 = vector.broadcast %57 : vector<2x1xf32> to vector<2x34xf32>
    %59 = arith.subf %51, %58 : vector<2x34xf32>
    %60 = arith.mulf %59, %59 : vector<2x34xf32>
    %61 = vector.broadcast %50 : vector<1x34xf32> to vector<2x34xf32>
    %62 = arith.mulf %60, %61 : vector<2x34xf32>
    %cst_28 = arith.constant dense<0.000000e+00> : vector<2xf32>
    %63 = vector.multi_reduction <add>, %62, %cst_28 [1] : vector<2x34xf32> to vector<2xf32>
    %64 = vector.shape_cast %63 : vector<2xf32> to vector<2x1xf32>
    %cst_29 = arith.constant 3.125000e-02 : f32
    %65 = vector.broadcast %cst_29 : f32 to vector<2x1xf32>
    %66 = arith.mulf %64, %65 : vector<2x1xf32>
    %cst_30 = arith.constant 9.99999974E-6 : f32
    %67 = vector.broadcast %cst_30 : f32 to vector<2x1xf32>
    %68 = arith.addf %66, %67 : vector<2x1xf32>
    %69 = math.rsqrt %68 : vector<2x1xf32>
    %70 = arith.mulf %69, %43 : vector<2x1xf32>
    %71 = vector.broadcast %70 : vector<2x1xf32> to vector<2x34xf32>
    %72 = arith.mulf %59, %71 : vector<2x34xf32>
    %73 = vector.broadcast %45 : vector<2x1xf32> to vector<2x34xf32>
    %74 = arith.addf %72, %73 : vector<2x34xf32>
    %cst_31 = arith.constant 0.000000e+00 : f32
    %75 = vector.broadcast %cst_31 : f32 to vector<2x34xf32>
    %76 = arith.cmpf oge, %74, %75 : vector<2x34xf32>
    %cst_32 = arith.constant 1.000000e-01 : f32
    %77 = vector.broadcast %cst_32 : f32 to vector<2x34xf32>
    %78 = arith.mulf %77, %74 : vector<2x34xf32>
    %79 = arith.select %76, %74, %78 : vector<2x34xi1>, vector<2x34xf32>
    %80 = vector.broadcast %50 : vector<1x34xf32> to vector<2x34xf32>
    %81 = arith.mulf %79, %80 : vector<2x34xf32>
    %cst_33 = arith.constant 0.000000e+00 : f32
    %82 = vector.broadcast %cst_33 : f32 to vector<2x1xf32>
    %83 = tpu.concatenate %82, %81, %82 in 1 : vector<2x1xf32>, vector<2x34xf32>, vector<2x1xf32> -> vector<2x36xf32>
    %c1 = arith.constant 1 : index
    %c0_34 = arith.constant 0 : index
    %c0_35 = arith.constant 0 : index
    %84 = vector.load %arg6[%c1, %c0_34, %c0_35] : memref<5x2x6xf32, #tpu.memory_space<vmem>>, vector<1x2x6xf32>
    %85 = vector.shape_cast %84 : vector<1x2x6xf32> to vector<2x6xf32>
    %c1_36 = arith.constant 1 : index
    %c0_37 = arith.constant 0 : index
    %c0_38 = arith.constant 0 : index
    %86 = vector.load %arg7[%c1_36, %c0_37, %c0_38] : memref<5x2x1xf32, #tpu.memory_space<vmem>>, vector<1x2x1xf32>
    %87 = vector.shape_cast %86 : vector<1x2x1xf32> to vector<2x1xf32>
    %c1_39 = arith.constant 1 : index
    %c0_40 = arith.constant 0 : index
    %c0_41 = arith.constant 0 : index
    %88 = vector.load %arg8[%c1_39, %c0_40, %c0_41] : memref<5x2x1xf32, #tpu.memory_space<vmem>>, vector<1x2x1xf32>
    %89 = vector.shape_cast %88 : vector<1x2x1xf32> to vector<2x1xf32>
    %90 = vector.extract_strided_slice %38 {offsets = [0, 0], sizes = [2, 34], strides = [1, 1]} : vector<2x36xf32> to vector<2x34xf32>
    %91 = vector.extract_strided_slice %38 {offsets = [0, 1], sizes = [2, 34], strides = [1, 1]} : vector<2x36xf32> to vector<2x34xf32>
    %92 = vector.extract_strided_slice %38 {offsets = [0, 2], sizes = [2, 34], strides = [1, 1]} : vector<2x36xf32> to vector<2x34xf32>
    %93 = tpu.concatenate %90, %91, %92 in 0 : vector<2x34xf32>, vector<2x34xf32>, vector<2x34xf32> -> vector<6x34xf32>
    %94 = vector.extract_strided_slice %1 {offsets = [0, 1], sizes = [1, 34], strides = [1, 1]} : vector<1x36xf32> to vector<1x34xf32>
    %cst_42 = arith.constant dense<0.000000e+00> : vector<2x34xf32>
    %95 = tpu.matmul %85, %93, %cst_42 {dimension_numbers = #tpu.dot_dimension_numbers<[1], [0], [0], [1], [0, 0, 1, 1], [], []>} : vector<2x6xf32>, vector<6x34xf32>, vector<2x34xf32> -> vector<2x34xf32>
    %96 = vector.broadcast %94 : vector<1x34xf32> to vector<2x34xf32>
    %97 = arith.mulf %95, %96 : vector<2x34xf32>
    %cst_43 = arith.constant dense<0.000000e+00> : vector<2xf32>
    %98 = vector.multi_reduction <add>, %97, %cst_43 [1] : vector<2x34xf32> to vector<2xf32>
    %99 = vector.shape_cast %98 : vector<2xf32> to vector<2x1xf32>
    %cst_44 = arith.constant 3.125000e-02 : f32
    %100 = vector.broadcast %cst_44 : f32 to vector<2x1xf32>
    %101 = arith.mulf %99, %100 : vector<2x1xf32>
    %102 = vector.broadcast %101 : vector<2x1xf32> to vector<2x34xf32>
    %103 = arith.subf %95, %102 : vector<2x34xf32>
    %104 = arith.mulf %103, %103 : vector<2x34xf32>
    %105 = vector.broadcast %94 : vector<1x34xf32> to vector<2x34xf32>
    %106 = arith.mulf %104, %105 : vector<2x34xf32>
    %cst_45 = arith.constant dense<0.000000e+00> : vector<2xf32>
    %107 = vector.multi_reduction <add>, %106, %cst_45 [1] : vector<2x34xf32> to vector<2xf32>
    %108 = vector.shape_cast %107 : vector<2xf32> to vector<2x1xf32>
    %cst_46 = arith.constant 3.125000e-02 : f32
    %109 = vector.broadcast %cst_46 : f32 to vector<2x1xf32>
    %110 = arith.mulf %108, %109 : vector<2x1xf32>
    %cst_47 = arith.constant 9.99999974E-6 : f32
    %111 = vector.broadcast %cst_47 : f32 to vector<2x1xf32>
    %112 = arith.addf %110, %111 : vector<2x1xf32>
    %113 = math.rsqrt %112 : vector<2x1xf32>
    %114 = arith.mulf %113, %87 : vector<2x1xf32>
    %115 = vector.broadcast %114 : vector<2x1xf32> to vector<2x34xf32>
    %116 = arith.mulf %103, %115 : vector<2x34xf32>
    %117 = vector.broadcast %89 : vector<2x1xf32> to vector<2x34xf32>
    %118 = arith.addf %116, %117 : vector<2x34xf32>
    %cst_48 = arith.constant 0.000000e+00 : f32
    %119 = vector.broadcast %cst_48 : f32 to vector<2x34xf32>
    %120 = arith.cmpf oge, %118, %119 : vector<2x34xf32>
    %cst_49 = arith.constant 1.000000e-01 : f32
    %121 = vector.broadcast %cst_49 : f32 to vector<2x34xf32>
    %122 = arith.mulf %121, %118 : vector<2x34xf32>
    %123 = arith.select %120, %118, %122 : vector<2x34xi1>, vector<2x34xf32>
    %124 = vector.broadcast %94 : vector<1x34xf32> to vector<2x34xf32>
    %125 = arith.mulf %123, %124 : vector<2x34xf32>
    %cst_50 = arith.constant 0.000000e+00 : f32
    %126 = vector.broadcast %cst_50 : f32 to vector<2x1xf32>
    %127 = tpu.concatenate %126, %125, %126 in 1 : vector<2x1xf32>, vector<2x34xf32>, vector<2x1xf32> -> vector<2x36xf32>
    %c1_51 = arith.constant 1 : index
    %c0_52 = arith.constant 0 : index
    %c0_53 = arith.constant 0 : index
    %128 = vector.load %arg6[%c1_51, %c0_52, %c0_53] : memref<5x2x6xf32, #tpu.memory_space<vmem>>, vector<1x2x6xf32>
    %129 = vector.shape_cast %128 : vector<1x2x6xf32> to vector<2x6xf32>
    %c1_54 = arith.constant 1 : index
    %c0_55 = arith.constant 0 : index
    %c0_56 = arith.constant 0 : index
    %130 = vector.load %arg7[%c1_54, %c0_55, %c0_56] : memref<5x2x1xf32, #tpu.memory_space<vmem>>, vector<1x2x1xf32>
    %131 = vector.shape_cast %130 : vector<1x2x1xf32> to vector<2x1xf32>
    %c1_57 = arith.constant 1 : index
    %c0_58 = arith.constant 0 : index
    %c0_59 = arith.constant 0 : index
    %132 = vector.load %arg8[%c1_57, %c0_58, %c0_59] : memref<5x2x1xf32, #tpu.memory_space<vmem>>, vector<1x2x1xf32>
    %133 = vector.shape_cast %132 : vector<1x2x1xf32> to vector<2x1xf32>
    %134 = vector.extract_strided_slice %127 {offsets = [0, 0], sizes = [2, 34], strides = [1, 1]} : vector<2x36xf32> to vector<2x34xf32>
    %135 = vector.extract_strided_slice %127 {offsets = [0, 1], sizes = [2, 34], strides = [1, 1]} : vector<2x36xf32> to vector<2x34xf32>
    %136 = vector.extract_strided_slice %127 {offsets = [0, 2], sizes = [2, 34], strides = [1, 1]} : vector<2x36xf32> to vector<2x34xf32>
    %137 = tpu.concatenate %134, %135, %136 in 0 : vector<2x34xf32>, vector<2x34xf32>, vector<2x34xf32> -> vector<6x34xf32>
    %138 = vector.extract_strided_slice %1 {offsets = [0, 1], sizes = [1, 34], strides = [1, 1]} : vector<1x36xf32> to vector<1x34xf32>
    %cst_60 = arith.constant dense<0.000000e+00> : vector<2x34xf32>
    %139 = tpu.matmul %129, %137, %cst_60 {dimension_numbers = #tpu.dot_dimension_numbers<[1], [0], [0], [1], [0, 0, 1, 1], [], []>} : vector<2x6xf32>, vector<6x34xf32>, vector<2x34xf32> -> vector<2x34xf32>
    %140 = vector.broadcast %138 : vector<1x34xf32> to vector<2x34xf32>
    %141 = arith.mulf %139, %140 : vector<2x34xf32>
    %cst_61 = arith.constant dense<0.000000e+00> : vector<2xf32>
    %142 = vector.multi_reduction <add>, %141, %cst_61 [1] : vector<2x34xf32> to vector<2xf32>
    %143 = vector.shape_cast %142 : vector<2xf32> to vector<2x1xf32>
    %cst_62 = arith.constant 3.125000e-02 : f32
    %144 = vector.broadcast %cst_62 : f32 to vector<2x1xf32>
    %145 = arith.mulf %143, %144 : vector<2x1xf32>
    %146 = vector.broadcast %145 : vector<2x1xf32> to vector<2x34xf32>
    %147 = arith.subf %139, %146 : vector<2x34xf32>
    %148 = arith.mulf %147, %147 : vector<2x34xf32>
    %149 = vector.broadcast %138 : vector<1x34xf32> to vector<2x34xf32>
    %150 = arith.mulf %148, %149 : vector<2x34xf32>
    %cst_63 = arith.constant dense<0.000000e+00> : vector<2xf32>
    %151 = vector.multi_reduction <add>, %150, %cst_63 [1] : vector<2x34xf32> to vector<2xf32>
    %152 = vector.shape_cast %151 : vector<2xf32> to vector<2x1xf32>
    %cst_64 = arith.constant 3.125000e-02 : f32
    %153 = vector.broadcast %cst_64 : f32 to vector<2x1xf32>
    %154 = arith.mulf %152, %153 : vector<2x1xf32>
    %cst_65 = arith.constant 9.99999974E-6 : f32
    %155 = vector.broadcast %cst_65 : f32 to vector<2x1xf32>
    %156 = arith.addf %154, %155 : vector<2x1xf32>
    %157 = math.rsqrt %156 : vector<2x1xf32>
    %158 = arith.mulf %157, %131 : vector<2x1xf32>
    %159 = vector.broadcast %158 : vector<2x1xf32> to vector<2x34xf32>
    %160 = arith.mulf %147, %159 : vector<2x34xf32>
    %161 = vector.broadcast %133 : vector<2x1xf32> to vector<2x34xf32>
    %162 = arith.addf %160, %161 : vector<2x34xf32>
    %cst_66 = arith.constant 0.000000e+00 : f32
    %163 = vector.broadcast %cst_66 : f32 to vector<2x34xf32>
    %164 = arith.cmpf oge, %162, %163 : vector<2x34xf32>
    %cst_67 = arith.constant 1.000000e-01 : f32
    %165 = vector.broadcast %cst_67 : f32 to vector<2x34xf32>
    %166 = arith.mulf %165, %162 : vector<2x34xf32>
    %167 = arith.select %164, %162, %166 : vector<2x34xi1>, vector<2x34xf32>
    %168 = vector.broadcast %138 : vector<1x34xf32> to vector<2x34xf32>
    %169 = arith.mulf %167, %168 : vector<2x34xf32>
    %cst_68 = arith.constant 0.000000e+00 : f32
    %170 = vector.broadcast %cst_68 : f32 to vector<2x1xf32>
    %171 = tpu.concatenate %170, %169, %170 in 1 : vector<2x1xf32>, vector<2x34xf32>, vector<2x1xf32> -> vector<2x36xf32>
    %c2 = arith.constant 2 : index
    %c0_69 = arith.constant 0 : index
    %c0_70 = arith.constant 0 : index
    %172 = vector.load %arg6[%c2, %c0_69, %c0_70] : memref<5x2x6xf32, #tpu.memory_space<vmem>>, vector<1x2x6xf32>
    %173 = vector.shape_cast %172 : vector<1x2x6xf32> to vector<2x6xf32>
    %c2_71 = arith.constant 2 : index
    %c0_72 = arith.constant 0 : index
    %c0_73 = arith.constant 0 : index
    %174 = vector.load %arg7[%c2_71, %c0_72, %c0_73] : memref<5x2x1xf32, #tpu.memory_space<vmem>>, vector<1x2x1xf32>
    %175 = vector.shape_cast %174 : vector<1x2x1xf32> to vector<2x1xf32>
    %c2_74 = arith.constant 2 : index
    %c0_75 = arith.constant 0 : index
    %c0_76 = arith.constant 0 : index
    %176 = vector.load %arg8[%c2_74, %c0_75, %c0_76] : memref<5x2x1xf32, #tpu.memory_space<vmem>>, vector<1x2x1xf32>
    %177 = vector.shape_cast %176 : vector<1x2x1xf32> to vector<2x1xf32>
    %178 = vector.extract_strided_slice %39 {offsets = [0, 0], sizes = [2, 34], strides = [1, 1]} : vector<2x36xf32> to vector<2x34xf32>
    %179 = vector.extract_strided_slice %39 {offsets = [0, 1], sizes = [2, 34], strides = [1, 1]} : vector<2x36xf32> to vector<2x34xf32>
    %180 = vector.extract_strided_slice %39 {offsets = [0, 2], sizes = [2, 34], strides = [1, 1]} : vector<2x36xf32> to vector<2x34xf32>
    %181 = tpu.concatenate %178, %179, %180 in 0 : vector<2x34xf32>, vector<2x34xf32>, vector<2x34xf32> -> vector<6x34xf32>
    %182 = vector.extract_strided_slice %1 {offsets = [0, 1], sizes = [1, 34], strides = [1, 1]} : vector<1x36xf32> to vector<1x34xf32>
    %cst_77 = arith.constant dense<0.000000e+00> : vector<2x34xf32>
    %183 = tpu.matmul %173, %181, %cst_77 {dimension_numbers = #tpu.dot_dimension_numbers<[1], [0], [0], [1], [0, 0, 1, 1], [], []>} : vector<2x6xf32>, vector<6x34xf32>, vector<2x34xf32> -> vector<2x34xf32>
    %184 = vector.broadcast %182 : vector<1x34xf32> to vector<2x34xf32>
    %185 = arith.mulf %183, %184 : vector<2x34xf32>
    %cst_78 = arith.constant dense<0.000000e+00> : vector<2xf32>
    %186 = vector.multi_reduction <add>, %185, %cst_78 [1] : vector<2x34xf32> to vector<2xf32>
    %187 = vector.shape_cast %186 : vector<2xf32> to vector<2x1xf32>
    %cst_79 = arith.constant 3.125000e-02 : f32
    %188 = vector.broadcast %cst_79 : f32 to vector<2x1xf32>
    %189 = arith.mulf %187, %188 : vector<2x1xf32>
    %190 = vector.broadcast %189 : vector<2x1xf32> to vector<2x34xf32>
    %191 = arith.subf %183, %190 : vector<2x34xf32>
    %192 = arith.mulf %191, %191 : vector<2x34xf32>
    %193 = vector.broadcast %182 : vector<1x34xf32> to vector<2x34xf32>
    %194 = arith.mulf %192, %193 : vector<2x34xf32>
    %cst_80 = arith.constant dense<0.000000e+00> : vector<2xf32>
    %195 = vector.multi_reduction <add>, %194, %cst_80 [1] : vector<2x34xf32> to vector<2xf32>
    %196 = vector.shape_cast %195 : vector<2xf32> to vector<2x1xf32>
    %cst_81 = arith.constant 3.125000e-02 : f32
    %197 = vector.broadcast %cst_81 : f32 to vector<2x1xf32>
    %198 = arith.mulf %196, %197 : vector<2x1xf32>
    %cst_82 = arith.constant 9.99999974E-6 : f32
    %199 = vector.broadcast %cst_82 : f32 to vector<2x1xf32>
    %200 = arith.addf %198, %199 : vector<2x1xf32>
    %201 = math.rsqrt %200 : vector<2x1xf32>
    %202 = arith.mulf %201, %175 : vector<2x1xf32>
    %203 = vector.broadcast %202 : vector<2x1xf32> to vector<2x34xf32>
    %204 = arith.mulf %191, %203 : vector<2x34xf32>
    %205 = vector.broadcast %177 : vector<2x1xf32> to vector<2x34xf32>
    %206 = arith.addf %204, %205 : vector<2x34xf32>
    %cst_83 = arith.constant 0.000000e+00 : f32
    %207 = vector.broadcast %cst_83 : f32 to vector<2x34xf32>
    %208 = arith.cmpf oge, %206, %207 : vector<2x34xf32>
    %cst_84 = arith.constant 1.000000e-01 : f32
    %209 = vector.broadcast %cst_84 : f32 to vector<2x34xf32>
    %210 = arith.mulf %209, %206 : vector<2x34xf32>
    %211 = arith.select %208, %206, %210 : vector<2x34xi1>, vector<2x34xf32>
    %212 = vector.broadcast %182 : vector<1x34xf32> to vector<2x34xf32>
    %213 = arith.mulf %211, %212 : vector<2x34xf32>
    %cst_85 = arith.constant 0.000000e+00 : f32
    %214 = vector.broadcast %cst_85 : f32 to vector<2x1xf32>
    %215 = tpu.concatenate %214, %213, %214 in 1 : vector<2x1xf32>, vector<2x34xf32>, vector<2x1xf32> -> vector<2x36xf32>
    %c3 = arith.constant 3 : index
    %c0_86 = arith.constant 0 : index
    %c0_87 = arith.constant 0 : index
    %216 = vector.load %arg6[%c3, %c0_86, %c0_87] : memref<5x2x6xf32, #tpu.memory_space<vmem>>, vector<1x2x6xf32>
    %217 = vector.shape_cast %216 : vector<1x2x6xf32> to vector<2x6xf32>
    %c3_88 = arith.constant 3 : index
    %c0_89 = arith.constant 0 : index
    %c0_90 = arith.constant 0 : index
    %218 = vector.load %arg7[%c3_88, %c0_89, %c0_90] : memref<5x2x1xf32, #tpu.memory_space<vmem>>, vector<1x2x1xf32>
    %219 = vector.shape_cast %218 : vector<1x2x1xf32> to vector<2x1xf32>
    %c3_91 = arith.constant 3 : index
    %c0_92 = arith.constant 0 : index
    %c0_93 = arith.constant 0 : index
    %220 = vector.load %arg8[%c3_91, %c0_92, %c0_93] : memref<5x2x1xf32, #tpu.memory_space<vmem>>, vector<1x2x1xf32>
    %221 = vector.shape_cast %220 : vector<1x2x1xf32> to vector<2x1xf32>
    %222 = vector.extract_strided_slice %215 {offsets = [0, 0], sizes = [2, 34], strides = [1, 1]} : vector<2x36xf32> to vector<2x34xf32>
    %223 = vector.extract_strided_slice %215 {offsets = [0, 1], sizes = [2, 34], strides = [1, 1]} : vector<2x36xf32> to vector<2x34xf32>
    %224 = vector.extract_strided_slice %215 {offsets = [0, 2], sizes = [2, 34], strides = [1, 1]} : vector<2x36xf32> to vector<2x34xf32>
    %225 = tpu.concatenate %222, %223, %224 in 0 : vector<2x34xf32>, vector<2x34xf32>, vector<2x34xf32> -> vector<6x34xf32>
    %226 = vector.extract_strided_slice %1 {offsets = [0, 1], sizes = [1, 34], strides = [1, 1]} : vector<1x36xf32> to vector<1x34xf32>
    %cst_94 = arith.constant dense<0.000000e+00> : vector<2x34xf32>
    %227 = tpu.matmul %217, %225, %cst_94 {dimension_numbers = #tpu.dot_dimension_numbers<[1], [0], [0], [1], [0, 0, 1, 1], [], []>} : vector<2x6xf32>, vector<6x34xf32>, vector<2x34xf32> -> vector<2x34xf32>
    %228 = vector.broadcast %226 : vector<1x34xf32> to vector<2x34xf32>
    %229 = arith.mulf %227, %228 : vector<2x34xf32>
    %cst_95 = arith.constant dense<0.000000e+00> : vector<2xf32>
    %230 = vector.multi_reduction <add>, %229, %cst_95 [1] : vector<2x34xf32> to vector<2xf32>
    %231 = vector.shape_cast %230 : vector<2xf32> to vector<2x1xf32>
    %cst_96 = arith.constant 3.125000e-02 : f32
    %232 = vector.broadcast %cst_96 : f32 to vector<2x1xf32>
    %233 = arith.mulf %231, %232 : vector<2x1xf32>
    %234 = vector.broadcast %233 : vector<2x1xf32> to vector<2x34xf32>
    %235 = arith.subf %227, %234 : vector<2x34xf32>
    %236 = arith.mulf %235, %235 : vector<2x34xf32>
    %237 = vector.broadcast %226 : vector<1x34xf32> to vector<2x34xf32>
    %238 = arith.mulf %236, %237 : vector<2x34xf32>
    %cst_97 = arith.constant dense<0.000000e+00> : vector<2xf32>
    %239 = vector.multi_reduction <add>, %238, %cst_97 [1] : vector<2x34xf32> to vector<2xf32>
    %240 = vector.shape_cast %239 : vector<2xf32> to vector<2x1xf32>
    %cst_98 = arith.constant 3.125000e-02 : f32
    %241 = vector.broadcast %cst_98 : f32 to vector<2x1xf32>
    %242 = arith.mulf %240, %241 : vector<2x1xf32>
    %cst_99 = arith.constant 9.99999974E-6 : f32
    %243 = vector.broadcast %cst_99 : f32 to vector<2x1xf32>
    %244 = arith.addf %242, %243 : vector<2x1xf32>
    %245 = math.rsqrt %244 : vector<2x1xf32>
    %246 = arith.mulf %245, %219 : vector<2x1xf32>
    %247 = vector.broadcast %246 : vector<2x1xf32> to vector<2x34xf32>
    %248 = arith.mulf %235, %247 : vector<2x34xf32>
    %249 = vector.broadcast %221 : vector<2x1xf32> to vector<2x34xf32>
    %250 = arith.addf %248, %249 : vector<2x34xf32>
    %cst_100 = arith.constant 0.000000e+00 : f32
    %251 = vector.broadcast %cst_100 : f32 to vector<2x34xf32>
    %252 = arith.cmpf oge, %250, %251 : vector<2x34xf32>
    %cst_101 = arith.constant 1.000000e-01 : f32
    %253 = vector.broadcast %cst_101 : f32 to vector<2x34xf32>
    %254 = arith.mulf %253, %250 : vector<2x34xf32>
    %255 = arith.select %252, %250, %254 : vector<2x34xi1>, vector<2x34xf32>
    %256 = vector.broadcast %226 : vector<1x34xf32> to vector<2x34xf32>
    %257 = arith.mulf %255, %256 : vector<2x34xf32>
    %cst_102 = arith.constant 0.000000e+00 : f32
    %258 = vector.broadcast %cst_102 : f32 to vector<2x1xf32>
    %259 = tpu.concatenate %258, %257, %258 in 1 : vector<2x1xf32>, vector<2x34xf32>, vector<2x1xf32> -> vector<2x36xf32>
    %c4 = arith.constant 4 : index
    %c0_103 = arith.constant 0 : index
    %c0_104 = arith.constant 0 : index
    %260 = vector.load %arg6[%c4, %c0_103, %c0_104] : memref<5x2x6xf32, #tpu.memory_space<vmem>>, vector<1x2x6xf32>
    %261 = vector.shape_cast %260 : vector<1x2x6xf32> to vector<2x6xf32>
    %c4_105 = arith.constant 4 : index
    %c0_106 = arith.constant 0 : index
    %c0_107 = arith.constant 0 : index
    %262 = vector.load %arg7[%c4_105, %c0_106, %c0_107] : memref<5x2x1xf32, #tpu.memory_space<vmem>>, vector<1x2x1xf32>
    %263 = vector.shape_cast %262 : vector<1x2x1xf32> to vector<2x1xf32>
    %c4_108 = arith.constant 4 : index
    %c0_109 = arith.constant 0 : index
    %c0_110 = arith.constant 0 : index
    %264 = vector.load %arg8[%c4_108, %c0_109, %c0_110] : memref<5x2x1xf32, #tpu.memory_space<vmem>>, vector<1x2x1xf32>
    %265 = vector.shape_cast %264 : vector<1x2x1xf32> to vector<2x1xf32>
    %266 = vector.extract_strided_slice %259 {offsets = [0, 0], sizes = [2, 34], strides = [1, 1]} : vector<2x36xf32> to vector<2x34xf32>
    %267 = vector.extract_strided_slice %259 {offsets = [0, 1], sizes = [2, 34], strides = [1, 1]} : vector<2x36xf32> to vector<2x34xf32>
    %268 = vector.extract_strided_slice %259 {offsets = [0, 2], sizes = [2, 34], strides = [1, 1]} : vector<2x36xf32> to vector<2x34xf32>
    %269 = tpu.concatenate %266, %267, %268 in 0 : vector<2x34xf32>, vector<2x34xf32>, vector<2x34xf32> -> vector<6x34xf32>
    %270 = vector.extract_strided_slice %1 {offsets = [0, 1], sizes = [1, 34], strides = [1, 1]} : vector<1x36xf32> to vector<1x34xf32>
    %cst_111 = arith.constant dense<0.000000e+00> : vector<2x34xf32>
    %271 = tpu.matmul %261, %269, %cst_111 {dimension_numbers = #tpu.dot_dimension_numbers<[1], [0], [0], [1], [0, 0, 1, 1], [], []>} : vector<2x6xf32>, vector<6x34xf32>, vector<2x34xf32> -> vector<2x34xf32>
    %272 = vector.broadcast %270 : vector<1x34xf32> to vector<2x34xf32>
    %273 = arith.mulf %271, %272 : vector<2x34xf32>
    %cst_112 = arith.constant dense<0.000000e+00> : vector<2xf32>
    %274 = vector.multi_reduction <add>, %273, %cst_112 [1] : vector<2x34xf32> to vector<2xf32>
    %275 = vector.shape_cast %274 : vector<2xf32> to vector<2x1xf32>
    %cst_113 = arith.constant 3.125000e-02 : f32
    %276 = vector.broadcast %cst_113 : f32 to vector<2x1xf32>
    %277 = arith.mulf %275, %276 : vector<2x1xf32>
    %278 = vector.broadcast %277 : vector<2x1xf32> to vector<2x34xf32>
    %279 = arith.subf %271, %278 : vector<2x34xf32>
    %280 = arith.mulf %279, %279 : vector<2x34xf32>
    %281 = vector.broadcast %270 : vector<1x34xf32> to vector<2x34xf32>
    %282 = arith.mulf %280, %281 : vector<2x34xf32>
    %cst_114 = arith.constant dense<0.000000e+00> : vector<2xf32>
    %283 = vector.multi_reduction <add>, %282, %cst_114 [1] : vector<2x34xf32> to vector<2xf32>
    %284 = vector.shape_cast %283 : vector<2xf32> to vector<2x1xf32>
    %cst_115 = arith.constant 3.125000e-02 : f32
    %285 = vector.broadcast %cst_115 : f32 to vector<2x1xf32>
    %286 = arith.mulf %284, %285 : vector<2x1xf32>
    %cst_116 = arith.constant 9.99999974E-6 : f32
    %287 = vector.broadcast %cst_116 : f32 to vector<2x1xf32>
    %288 = arith.addf %286, %287 : vector<2x1xf32>
    %289 = math.rsqrt %288 : vector<2x1xf32>
    %290 = arith.mulf %289, %263 : vector<2x1xf32>
    %291 = vector.broadcast %290 : vector<2x1xf32> to vector<2x34xf32>
    %292 = arith.mulf %279, %291 : vector<2x34xf32>
    %293 = vector.broadcast %265 : vector<2x1xf32> to vector<2x34xf32>
    %294 = arith.addf %292, %293 : vector<2x34xf32>
    %cst_117 = arith.constant 0.000000e+00 : f32
    %295 = vector.broadcast %cst_117 : f32 to vector<2x34xf32>
    %296 = arith.cmpf oge, %294, %295 : vector<2x34xf32>
    %cst_118 = arith.constant 1.000000e-01 : f32
    %297 = vector.broadcast %cst_118 : f32 to vector<2x34xf32>
    %298 = arith.mulf %297, %294 : vector<2x34xf32>
    %299 = arith.select %296, %294, %298 : vector<2x34xi1>, vector<2x34xf32>
    %300 = vector.broadcast %270 : vector<1x34xf32> to vector<2x34xf32>
    %301 = arith.mulf %299, %300 : vector<2x34xf32>
    %cst_119 = arith.constant 0.000000e+00 : f32
    %302 = vector.broadcast %cst_119 : f32 to vector<2x1xf32>
    %303 = tpu.concatenate %302, %301, %302 in 1 : vector<2x1xf32>, vector<2x34xf32>, vector<2x1xf32> -> vector<2x36xf32>
    %304 = tpu.concatenate %36, %83, %171, %303 in 0 : vector<2x36xf32>, vector<2x36xf32>, vector<2x36xf32>, vector<2x36xf32> -> vector<8x36xf32>
    %c0_120 = arith.constant 0 : index
    %c0_121 = arith.constant 0 : index
    %305 = vector.load %arg9[%c0_120, %c0_121] : memref<8x36xf32, #tpu.memory_space<vmem>>, vector<8x36xf32>
    tpu.vector_store %arg9[%c0_120, %c0_121], %304 {strides = array<i32>} : memref<8x36xf32, #tpu.memory_space<vmem>>, vector<8x36xf32>,
    return
  }
  func.func @transform_0(%arg0: i32) -> (i32, i32) {
    %c0_i32 = arith.constant 0 : i32
    %c0_i32_0 = arith.constant 0 : i32
    %c0_i32_1 = arith.constant 0 : i32
    return %c0_i32, %c0_i32_0 : i32, i32
  }
  func.func @transform_1(%arg0: i32) -> (i32, i32) {
    %c0_i32 = arith.constant 0 : i32
    %c0_i32_0 = arith.constant 0 : i32
    %c0_i32_1 = arith.constant 0 : i32
    return %c0_i32, %c0_i32_0 : i32, i32
  }
  func.func @transform_2(%arg0: i32) -> (i32, i32) {
    %c0_i32 = arith.constant 0 : i32
    %c0_i32_0 = arith.constant 0 : i32
    %c0_i32_1 = arith.constant 0 : i32
    return %c0_i32, %c0_i32_0 : i32, i32
  }
  func.func @transform_3(%arg0: i32) -> (i32, i32) {
    %c0_i32 = arith.constant 0 : i32
    %c0_i32_0 = arith.constant 0 : i32
    %c0_i32_1 = arith.constant 0 : i32
    return %c0_i32, %c0_i32_0 : i32, i32
  }
  func.func @transform_4(%arg0: i32) -> (i32, i32) {
    %c0_i32 = arith.constant 0 : i32
    %c0_i32_0 = arith.constant 0 : i32
    %c0_i32_1 = arith.constant 0 : i32
    return %c0_i32, %c0_i32_0 : i32, i32
  }
  func.func @transform_5(%arg0: i32) -> (i32, i32, i32) {
    %c0_i32 = arith.constant 0 : i32
    %c0_i32_0 = arith.constant 0 : i32
    %c0_i32_1 = arith.constant 0 : i32
    %c0_i32_2 = arith.constant 0 : i32
    return %c0_i32, %c0_i32_0, %c0_i32_1 : i32, i32, i32
  }
  func.func @transform_6(%arg0: i32) -> (i32, i32, i32) {
    %c0_i32 = arith.constant 0 : i32
    %c0_i32_0 = arith.constant 0 : i32
    %c0_i32_1 = arith.constant 0 : i32
    %c0_i32_2 = arith.constant 0 : i32
    return %c0_i32, %c0_i32_0, %c0_i32_1 : i32, i32, i32
  }
  func.func @transform_7(%arg0: i32) -> (i32, i32, i32) {
    %c0_i32 = arith.constant 0 : i32
    %c0_i32_0 = arith.constant 0 : i32
    %c0_i32_1 = arith.constant 0 : i32
    %c0_i32_2 = arith.constant 0 : i32
    return %c0_i32, %c0_i32_0, %c0_i32_1 : i32, i32, i32
  }
  func.func @transform_8(%arg0: i32) -> (i32, i32) {
    %c0_i32 = arith.constant 0 : i32
    %c0_i32_0 = arith.constant 0 : i32
    %c0_i32_1 = arith.constant 0 : i32
    return %c0_i32, %c0_i32_0 : i32, i32
  }
}

</mosaic_0001>

<bundles_post_ra>
// kernel: tpu_custom_call.1
= control target key start
LH: loop header
LB: loop body
LE: loop exit
PB: predicated region body
PF: predicated region fallthrough
CT: control target
= control target key end

     0   :  { %vm35_vm0 = vcmask 64512   ;;  %v1067_v2 = vmov 0.0   ;;  %vm1068_vm1 = vmmov 0   ;;  %s1338_s0 = inlined_call_operand.vmem [shape: f32[8,36], index: 0, kind: input, shape index: {}]   ;;  %s1339_s1 = inlined_call_operand.vmem [shape: f32[1,36], index: 1, kind: input, shape index: {}]   ;;  %s1340_s2 = inlined_call_operand.vmem [shape: f32[8,8], index: 2, kind: input, shape index: {}]   ;;  %s1341_s3 = inlined_call_operand.vmem [shape: f32[8,1], index: 3, kind: input, shape index: {}]   ;;  %s1342_s4 = inlined_call_operand.vmem [shape: f32[8,1], index: 4, kind: input, shape index: {}]   ;;  %s1343_s5 = inlined_call_operand.vmem [shape: f32[5,2,6], index: 5, kind: input, shape index: {}]   ;;  %s1344_s6 = inlined_call_operand.vmem [shape: f32[5,2,1], index: 6, kind: input, shape index: {}]   ;;  %s1345_s7 = inlined_call_operand.vmem [shape: f32[5,2,1], index: 7, kind: input, shape index: {}]   ;;  %s1346_s8 = inlined_call_operand.hbm [shape: f32[8,36], index: 8, kind: output, shape index: {}]  }
   0x1   :  { %v30_v0 = vld [vmem:[%s1338_s0] sm:$0xff]  ;;  %985 = vmatprep.subr.mxu0 %v1067_v2  ;;  %987 = vmatprep.mubr.msk.f32.mxu0 %vm1068_vm1, %v1067_v2 }
   0x2   :  { %v32_v1 = vld [vmem:[%s1340_s2] sm:$0xff] }
   0x3   :  { %13 = vsyncpa [#allocation3], 0  ;;  %986 = vmatpush3.msra.mxu0 %v30_v0  ;;  %990 = vmatprep.subr.mxu1 %v1067_v2  ;;  %v946_v3 = vld [vmem:[%s1339_s1] ss:$0 sm:$0xff]  ;;  %vm116_vm2 = vcmask 293888   ;;  %v1069_v14 = vmov 0  }
   0x4   :  { %988 = vmatmul.mubr.msk.f32.vlgmr.msra.gmra.mrb[0].mxu0 %vm35_vm0, %v32_v1  ;;  %995 = vmatprep.subr.mxu0 %v1067_v2  ;;  %v33_v18 = vld [vmem:[%s1341_s3] sm:$0xff]  ;;  %s1070_s12 = smov 126   ;;  %s1071_s3 = smov 127   ;;  %vm160_vm4 = vcmask 1041408   ;;  %vm162_vm5 = vcmask 1043456   ;;  %vm168_vm6 = vcmask 1045504  }
   0x5   :  { %997 = vmatprep.mubr.msk.f32.mxu0 %vm1068_vm1, %v1067_v2  ;;  %992 = vmatprep.mubr.msk.f32.mxu1 %vm1068_vm1, %v1067_v2  ;;  %v34_v21 = vld [vmem:[%s1342_s4] sm:$0xff]  ;;  %vm164_vm7 = vcmask 48128   ;;  %vm246_vm8 = vcmask 271360   ;;  %s1072_s24 = smov 1   ;;  %vm281_vm11 = vcmask 7168   ;;  %vm283_vm12 = vcmask 285696  }
   0x6   :  { %1027 = vset.pattern.permute.xlu1 %v1069_v14  ;;  %1028 = vset.pattern.permute.xlu0 %v1069_v14  ;;  %v1163_v34 = vld [vmem:[%s1343_s5 + $0x2] sm:$0x3]  ;;  %v956_v40 = vld [vmem:[%s1343_s5 + $0x4] sm:$0x3] }
   0x7   :  { %v951_v63 = vld [vmem:[%s1345_s7 + $0x2] sm:$0x3] }
  0xd7   :  { %v105_v4 = vpop.f32.mrb[0].mxu0 }
  0xd8   :  { %v989_v5 = vpop.f32.mrb[1].mxu0  ;;  %v115_v6 = vmul.f32 %v946_v3, %v105_v4 }
  0xda   :  { %v117_v7 = vsel %vm116_vm2, %v115_v6, 0.0 }
  0xdb   :  { %118 = vadd.xlane.f32.xlu0 %v117_v7  ;;  %v1201_v7 = vld [vmem:[%s1344_s6 + $0x2] sm:$0x3] }
 0x168   :  { %v119_v8 = vpop.xlane.xlu0 %118 }
 0x169   :  { %v120_v9 = vmul.f32 0.03125, %v119_v8 }
 0x16b   :  { %v121_v10 = vsub.f32 %v105_v4, %v120_v9 }
 0x16d   :  { %v122_v11 = vmul.f32 %v121_v10, %v121_v10 }
 0x16f   :  { %v123_v12 = vmul.f32 %v946_v3, %v122_v11 }
 0x171   :  { %v124_v13 = vsel %vm116_vm2, %v123_v12, 0.0 }
 0x172   :  { %125 = vadd.xlane.f32.xlu0 %v124_v13  ;;  %v958_v13 = vld [vmem:[%s1345_s7 + $0x4] sm:$0x3] }
 0x1ff   :  { %v126_v15 = vpop.xlane.xlu0 %125 }
 0x200   :  { %v127_v16 = vmul.f32 0.03125, %v126_v15 }
 0x202   :  { %v128_v17 = vadd.f32 1e-05, %v127_v16 }
 0x204   :  { %1029 = vrsqrt.f32 %v128_v17 }
 0x20e   :  { %v1030_v19 = vpop.eup %1029 }
 0x20f   :  { %v130_v20 = vmul.f32 %v1030_v19, %v33_v18 }
 0x211   :  { %133 = vperm.xlu1 %1027, %v130_v20  }
 0x215   :  { %139 = vperm.xlu1 %1027, %v34_v21  }
 0x290   :  { %v134_v22 = vpop.permute.xlu1 %133 }
 0x291   :  { %v136_v23 = vmul.f32 %v134_v22, %v121_v10  ;;  %v957_v10 = vld [vmem:[%s1344_s6 + $0x4] sm:$0x3] }
 0x294   :  { %v140_v24 = vpop.permute.xlu1 %139 }
 0x295   :  { %v142_v25 = vadd.f32 %v140_v24, %v136_v23 }
 0x297   :  { %vm143_vm3 = vcmp.ge.f32.partialorder %v142_v25, 0.0  ;;  %v144_v26 = vmul.f32 0.1, %v142_v25 }
 0x299   :  { %v145_v27 = vsel %vm143_vm3, %v142_v25, %v144_v26 }
 0x29a   :  { %v1145_v28 = vmul.f32 %v946_v3, %v145_v27 }
 0x29c   :  { %296 = vrot.lane.b32.xlu1 %v1145_v28, %s1070_s12  ;;  %v1150_v29 = vrot.slane %v1145_v28, 2  ;;  %v291_v30 = vrot.slane %v1145_v28, 4  ;;  %v156_v37 = vrot.slane %v1145_v28, 6 }
 0x29e   :  { %293 = vrot.lane.b32.xlu0 %v1150_v29, %s1071_s3 }
 0x2a0   :  { %537 = vrot.lane.b32.xlu1 %v291_v30, %s1071_s3 }
 0x2a4   :  { %540 = vrot.lane.b32.xlu1 %v1150_v29, %s1070_s12 }
 0x2a8   :  { %242 = vrot.lane.b32.xlu1 %v946_v3, %s1071_s3 }
 0x30e   :  { %v297_v31 = vpop.permute.xlu1 %296 }
 0x310   :  { %v294_v32 = vpop.permute.xlu0 %293 }
 0x311   :  { %v299_v33 = vsel %vm160_vm4, %v291_v30, %v294_v32 }
 0x312   :  { %v300_v35 = vsel %vm162_vm5, %v299_v33, %v297_v31  ;;  %v538_v36 = vpop.permute.xlu1 %537 }
 0x313   :  { %996 = vmatpush3.msk.msra.mxu0 %vm168_vm6, %v300_v35  ;;  %v543_v38 = vsel %vm160_vm4, %v156_v37, %v538_v36 }
 0x314   :  { %998 = vmatmul.mubr.msk.f32.vlgmr.msra.gmra.mrb[2].mxu0 %vm164_vm7, %v1163_v34  ;;  %1005 = vmatprep.subr.mxu0 %v1067_v2 }
 0x315   :  { %1007 = vmatprep.mubr.msk.f32.mxu0 %vm1068_vm1, %v1067_v2 }
 0x316   :  { %v541_v39 = vpop.permute.xlu1 %540 }
 0x317   :  { %v544_v41 = vsel %vm162_vm5, %v543_v38, %v541_v39 }
 0x318   :  { %1006 = vmatpush3.msk.msra.mxu0 %vm168_vm6, %v544_v41 }
 0x319   :  { %1008 = vmatmul.mubr.msk.f32.vlgmr.msra.gmra.mrb[4].mxu0 %vm164_vm7, %v956_v40  ;;  %1015 = vmatprep.subr.mxu0 %v1067_v2 }
 0x31a   :  { %1017 = vmatprep.mubr.msk.f32.mxu0 %vm1068_vm1, %v1067_v2  ;;  %v1185_v42 = vpop.permute.xlu1 %242 }
 0x3e7   :  { %v373_v43 = vpop.f32.mrb[2].mxu0 }
 0x3e8   :  { %v377_v44 = vmul.f32 %v373_v43, %v1185_v42  ;;  %v999_v45 = vpop.f32.mrb[3].mxu0 }
 0x3e9   :  { %v147_v45 = vld [vmem:[%s1343_s5] sm:$0x3] }
 0x3ea   :  { %v378_v46 = vsel %vm246_vm8, %v377_v44, 0.0 }
 0x3eb   :  { %379 = vadd.xlane.f32.xlu1 %v378_v46 }
 0x3ec   :  { %v617_v47 = vpop.f32.mrb[4].mxu0 }
 0x3ed   :  { %v621_v48 = vmul.f32 %v617_v47, %v1185_v42  ;;  %v1009_v49 = vpop.f32.mrb[5].mxu0 }
 0x3ef   :  { %v622_v50 = vsel %vm246_vm8, %v621_v48, 0.0 }
 0x3f0   :  { %623 = vadd.xlane.f32.xlu0 %v622_v50 }
 0x478   :  { %v380_v51 = vpop.xlane.xlu1 %379 }
 0x479   :  { %v381_v52 = vmul.f32 0.03125, %v380_v51 }
 0x47b   :  { %v382_v53 = vsub.f32 %v373_v43, %v381_v52 }
 0x47d   :  { %v624_v54 = vpop.xlane.xlu0 %623  ;;  %v383_v55 = vmul.f32 %v382_v53, %v382_v53 }
 0x47e   :  { %v625_v56 = vmul.f32 0.03125, %v624_v54 }
 0x47f   :  { %v384_v57 = vmul.f32 %v383_v55, %v1185_v42 }
 0x480   :  { %v626_v58 = vsub.f32 %v617_v47, %v625_v56 }
 0x481   :  { %v385_v59 = vsel %vm246_vm8, %v384_v57, 0.0 }
 0x482   :  { %386 = vadd.xlane.f32.xlu1 %v385_v59  ;;  %v627_v60 = vmul.f32 %v626_v58, %v626_v58 }
 0x484   :  { %v628_v61 = vmul.f32 %v627_v60, %v1185_v42 }
 0x486   :  { %v629_v62 = vsel %vm246_vm8, %v628_v61, 0.0  ;;  %v963_v61 = vld [vmem:[%s1345_s7 + $0x6] sm:$0x3] }
 0x487   :  { %630 = vadd.xlane.f32.xlu0 %v629_v62 }
 0x49d   :  { %400 = vperm.xlu0 %1028, %v951_v63  }
 0x50f   :  { %v387_v0 = vpop.xlane.xlu1 %386 }
 0x510   :  { %v388_v1 = vmul.f32 0.03125, %v387_v0 }
 0x512   :  { %v389_v3 = vadd.f32 1e-05, %v388_v1 }
 0x514   :  { %1031 = vrsqrt.f32 %v389_v3  ;;  %v631_v4 = vpop.xlane.xlu0 %630 }
 0x515   :  { %v632_v5 = vmul.f32 0.03125, %v631_v4 }
 0x517   :  { %v633_v6 = vadd.f32 1e-05, %v632_v5 }
 0x519   :  { %1033 = vrsqrt.f32 %v633_v6 }
 0x51c   :  { %v1210_v15 = vpop.permute.xlu0 %400 }
 0x51e   :  { %v1032_v8 = vpop.eup %1031 }
 0x51f   :  { %v391_v9 = vmul.f32 %v1032_v8, %v1201_v7 }
 0x521   :  { %394 = vperm.xlu1 %1027, %v391_v9   ;;  %v962_v9 = vld [vmem:[%s1344_s6 + $0x6] sm:$0x3] }
 0x523   :  { %v1034_v11 = vpop.eup %1033 }
 0x524   :  { %v635_v12 = vmul.f32 %v1034_v11, %v957_v10 }
 0x526   :  { %638 = vperm.xlu1 %1027, %v635_v12  }
 0x52a   :  { %644 = vperm.xlu1 %1027, %v958_v13  }
 0x5a0   :  { %v395_v14 = vpop.permute.xlu1 %394 }
 0x5a1   :  { %v397_v16 = vmul.f32 %v395_v14, %v382_v53  ;;  %v961_v53 = vld [vmem:[%s1343_s5 + $0x6] sm:$0x3] }
 0x5a3   :  { %v403_v17 = vadd.f32 %v1210_v15, %v397_v16 }
 0x5a5   :  { %vm404_vm9 = vcmp.ge.f32.partialorder %v403_v17, 0.0  ;;  %v405_v18 = vmul.f32 0.1, %v403_v17  ;;  %v639_v19 = vpop.permute.xlu1 %638 }
 0x5a6   :  { %v641_v21 = vmul.f32 %v639_v19, %v626_v58 }
 0x5a7   :  { %v406_v20 = vsel %vm404_vm9, %v403_v17, %v405_v18 }
 0x5a8   :  { %v407_v22 = vmul.f32 %v406_v20, %v1185_v42 }
 0x5a9   :  { %v645_v23 = vpop.permute.xlu1 %644 }
 0x5aa   :  { %v647_v24 = vadd.f32 %v645_v23, %v641_v21  ;;  %409 = vrot.lane.b32.xlu1 %v407_v22, %s1072_s24 }
 0x5ac   :  { %vm648_vm10 = vcmp.ge.f32.partialorder %v647_v24, 0.0  ;;  %v649_v25 = vmul.f32 0.1, %v647_v24 }
 0x5ae   :  { %v650_v26 = vsel %vm648_vm10, %v647_v24, %v649_v25 }
 0x5af   :  { %v651_v27 = vmul.f32 %v650_v26, %v1185_v42 }
 0x5b1   :  { %653 = vrot.lane.b32.xlu1 %v651_v27, %s1072_s24 }
 0x5b5   :  { %153 = vrot.lane.b32.xlu1 %v1145_v28, %s1071_s3 }
 0x5b9   :  { %157 = vrot.lane.b32.xlu1 %v156_v37, %s1070_s12 }
 0x61c   :  { %v410_v30 = vpop.permute.xlu1 %409 }
 0x61d   :  { %v412_v31 = vsel %vm281_vm11, 0.0, %v410_v30 }
 0x61e   :  { %v413_v32 = vsel %vm283_vm12, %v412_v31, 0.0 }
 0x61f   :  { %v415_v33 = vrot.slane %v413_v32, 6  ;;  %v419_v35 = vrot.slane %v413_v32, 4 }
 0x621   :  { %420 = vrot.lane.b32.xlu0 %v419_v35, %s1070_s12  ;;  %416 = vrot.lane.b32.xlu1 %v415_v33, %s1071_s3  ;;  %v966_v35 = vld [vmem:[%s1343_s5 + $0x8] sm:$0x3] }
 0x623   :  { %v654_v36 = vpop.permute.xlu1 %653 }
 0x624   :  { %v656_v38 = vsel %vm281_vm11, 0.0, %v654_v36 }
 0x625   :  { %v657_v39 = vsel %vm283_vm12, %v656_v38, 0.0 }
 0x626   :  { %v665_v40 = vrot.slane %v657_v39, 6  ;;  %v669_v37 = vrot.slane %v657_v39, 4 }
 0x627   :  { %v154_v41 = vpop.permute.xlu1 %153 }
 0x628   :  { %670 = vrot.lane.b32.xlu0 %v669_v37, %s1070_s12  ;;  %666 = vrot.lane.b32.xlu1 %v665_v40, %s1071_s3  ;;  %v161_v43 = vsel %vm160_vm4, %v1150_v29, %v154_v41 }
 0x62b   :  { %v158_v44 = vpop.permute.xlu1 %157 }
 0x62c   :  { %v163_v46 = vsel %vm162_vm5, %v161_v43, %v158_v44 }
 0x62d   :  { %991 = vmatpush3.msk.msra.mxu1 %vm168_vm6, %v163_v46 }
 0x62e   :  { %993 = vmatmul.mubr.msk.f32.vlgmr.msra.gmra.mrb[0].mxu1 %vm164_vm7, %v147_v45  ;;  %1000 = vmatprep.subr.mxu1 %v1067_v2 }
 0x62f   :  { %1002 = vmatprep.mubr.msk.f32.mxu1 %vm1068_vm1, %v1067_v2 }
 0x693   :  { %v421_v47 = vpop.permute.xlu0 %420  ;;  %v417_v48 = vpop.permute.xlu1 %416 }
 0x694   :  { %v423_v29 = vsel %vm160_vm4, %v413_v32, %v417_v48 }
 0x695   :  { %v424_v49 = vsel %vm162_vm5, %v423_v29, %v421_v47 }
 0x696   :  { %1001 = vmatpush3.msk.msra.mxu1 %vm168_vm6, %v424_v49 }
 0x697   :  { %1003 = vmatmul.mubr.msk.f32.vlgmr.msra.gmra.mrb[2].mxu1 %vm164_vm7, %v1163_v34  ;;  %1010 = vmatprep.subr.mxu1 %v1067_v2 }
 0x698   :  { %1012 = vmatprep.mubr.msk.f32.mxu1 %vm1068_vm1, %v1067_v2 }
 0x69a   :  { %v671_v50 = vpop.permute.xlu0 %670  ;;  %v667_v51 = vpop.permute.xlu1 %666 }
 0x69b   :  { %v673_v52 = vsel %vm160_vm4, %v657_v39, %v667_v51 }
 0x69c   :  { %v674_v54 = vsel %vm162_vm5, %v673_v52, %v671_v50 }
 0x69d   :  { %1011 = vmatpush3.msk.msra.mxu1 %vm168_vm6, %v674_v54 }
 0x69e   :  { %1013 = vmatmul.mubr.msk.f32.vlgmr.msra.gmra.mrb[4].mxu1 %vm164_vm7, %v961_v53 }
 0x701   :  { %v1256_v34 = vpop.f32.mrb[0].mxu1 }
 0x702   :  { %v994_v55 = vpop.f32.mrb[1].mxu1  ;;  %v245_v25 = vmul.f32 %v1185_v42, %v1256_v34 }
 0x704   :  { %v247_v26 = vsel %vm246_vm8, %v245_v25, 0.0 }
 0x76a   :  { %v494_v56 = vpop.f32.mrb[2].mxu1 }
 0x76b   :  { %v1004_v57 = vpop.f32.mrb[3].mxu1  ;;  %v498_v27 = vmul.f32 %v494_v56, %v1185_v42 }
 0x76d   :  { %v499_v30 = vsel %vm246_vm8, %v498_v27, 0.0 }
 0x771   :  { %v747_v2 = vpop.f32.mrb[4].mxu1 }
 0x772   :  { %v751_v58 = vmul.f32 %v747_v2, %v1185_v42  ;;  %v1014_v59 = vpop.f32.mrb[5].mxu1 }
 0x774   :  { %v752_v60 = vsel %vm246_vm8, %v751_v58, 0.0 }
 0x775   :  { %753 = vadd.xlane.f32.xlu1 %v752_v60 }
 0x786   :  { %774 = vperm.xlu1 %1027, %v963_v61  }
 0x802   :  { %v754_v62 = vpop.xlane.xlu1 %753 }
 0x803   :  { %v755_v63 = vmul.f32 0.03125, %v754_v62 }
 0x805   :  { %v756_v0 = vsub.f32 %v747_v2, %v755_v63  ;;  %v148_v63 = vld [vmem:[%s1344_s6] sm:$0x3] }
 0x806   :  { %v775_v14 = vpop.permute.xlu1 %774 }
 0x807   :  { %v757_v1 = vmul.f32 %v756_v0, %v756_v0 }
 0x809   :  { %v758_v3 = vmul.f32 %v757_v1, %v1185_v42 }
 0x80b   :  { %v759_v4 = vsel %vm246_vm8, %v758_v3, 0.0  ;;  %v149_v3 = vld [vmem:[%s1345_s7] sm:$0x3] }
 0x80c   :  { %760 = vadd.xlane.f32.xlu0 %v759_v4 }
 0x899   :  { %v761_v5 = vpop.xlane.xlu0 %760 }
 0x89a   :  { %v762_v6 = vmul.f32 0.03125, %v761_v5 }
 0x89c   :  { %v763_v8 = vadd.f32 1e-05, %v762_v6  ;;  %v968_v6 = vld [vmem:[%s1345_s7 + $0x8] sm:$0x3] }
 0x89e   :  { %1035 = vrsqrt.f32 %v763_v8 }
 0x8a8   :  { %v1036_v10 = vpop.eup %1035 }
 0x8a9   :  { %v765_v11 = vmul.f32 %v1036_v10, %v962_v9 }
 0x8ab   :  { %768 = vperm.xlu0 %1028, %v765_v11  }
 0x92a   :  { %v769_v12 = vpop.permute.xlu0 %768 }
 0x92b   :  { %v771_v13 = vmul.f32 %v769_v12, %v756_v0 }
 0x92d   :  { %v777_v16 = vadd.f32 %v775_v14, %v771_v13 }
 0x92f   :  { %vm778_vm13 = vcmp.ge.f32.partialorder %v777_v16, 0.0  ;;  %v779_v17 = vmul.f32 0.1, %v777_v16 }
 0x931   :  { %v780_v18 = vsel %vm778_vm13, %v777_v16, %v779_v17 }
 0x932   :  { %v781_v19 = vmul.f32 %v780_v18, %v1185_v42 }
 0x934   :  { %783 = vrot.lane.b32.xlu1 %v781_v19, %s1072_s24 }
 0x9a6   :  { %v784_v20 = vpop.permute.xlu1 %783 }
 0x9a7   :  { %v786_v21 = vsel %vm281_vm11, 0.0, %v784_v20 }
 0x9a8   :  { %v787_v22 = vsel %vm283_vm12, %v786_v21, 0.0 }
 0x9a9   :  { %v795_v23 = vrot.slane %v787_v22, 6  ;;  %v799_v24 = vrot.slane %v787_v22, 4 }
 0x9ab   :  { %800 = vrot.lane.b32.xlu1 %v799_v24, %s1070_s12  ;;  %796 = vrot.lane.b32.xlu0 %v795_v23, %s1071_s3 }
 0x9ca   :  { %248 = vadd.xlane.f32.xlu0 %v247_v26 }
 0x9cf   :  { %500 = vadd.xlane.f32.xlu1 %v499_v30 }
 0xa1d   :  { %v801_v31 = vpop.permute.xlu1 %800  ;;  %v797_v32 = vpop.permute.xlu0 %796 }
 0xa1e   :  { %v803_v33 = vsel %vm160_vm4, %v787_v22, %v797_v32 }
 0xa1f   :  { %v804_v36 = vsel %vm162_vm5, %v803_v33, %v801_v31 }
 0xa20   :  { %1016 = vmatpush3.msk.msra.mxu0 %vm168_vm6, %v804_v36 }
 0xa21   :  { %1018 = vmatmul.mubr.msk.f32.vlgmr.msra.gmra.mrb[6].mxu0 %vm164_vm7, %v966_v35 }
 0xa57   :  { %v249_v44 = vpop.xlane.xlu0 %248 }
 0xa58   :  { %v250_v45 = vmul.f32 0.03125, %v249_v44 }
 0xa5a   :  { %v251_v46 = vsub.f32 %v1256_v34, %v250_v45 }
 0xa5c   :  { %v501_v38 = vpop.xlane.xlu1 %500  ;;  %v252_v47 = vmul.f32 %v251_v46, %v251_v46 }
 0xa5d   :  { %v502_v39 = vmul.f32 0.03125, %v501_v38 }
 0xa5e   :  { %v253_v51 = vmul.f32 %v252_v47, %v1185_v42 }
 0xa5f   :  { %v503_v40 = vsub.f32 %v494_v56, %v502_v39 }
 0xa60   :  { %v254_v52 = vsel %vm246_vm8, %v253_v51, 0.0 }
 0xa61   :  { %v504_v37 = vmul.f32 %v503_v40, %v503_v40 }
 0xa63   :  { %v505_v41 = vmul.f32 %v504_v37, %v1185_v42 }
 0xa65   :  { %v506_v43 = vsel %vm246_vm8, %v505_v41, 0.0 }
 0xa66   :  { %507 = vadd.xlane.f32.xlu1 %v506_v43 }
 0xaf3   :  { %v508_v34 = vpop.xlane.xlu1 %507 }
 0xaf4   :  { %v877_v48 = vpop.f32.mrb[6].mxu0  ;;  %v509_v60 = vmul.f32 0.03125, %v508_v34 }
 0xaf5   :  { %v881_v29 = vmul.f32 %v877_v48, %v1185_v42  ;;  %v1019_v49 = vpop.f32.mrb[7].mxu0 }
 0xaf6   :  { %v510_v62 = vadd.f32 1e-05, %v509_v60 }
 0xaf7   :  { %v882_v50 = vsel %vm246_vm8, %v881_v29, 0.0 }
 0xaf8   :  { %883 = vadd.xlane.f32.xlu0 %v882_v50 }
 0xafc   :  { %255 = vadd.xlane.f32.xlu0 %v254_v52 }
 0xb85   :  { %v884_v53 = vpop.xlane.xlu0 %883 }
 0xb86   :  { %v885_v54 = vmul.f32 0.03125, %v884_v53 }
 0xb88   :  { %v886_v55 = vsub.f32 %v877_v48, %v885_v54 }
 0xb89   :  { %v256_v56 = vpop.xlane.xlu0 %255 }
 0xb8a   :  { %v257_v57 = vmul.f32 0.03125, %v256_v56  ;;  %v887_v2 = vmul.f32 %v886_v55, %v886_v55 }
 0xb8c   :  { %v258_v58 = vadd.f32 1e-05, %v257_v57  ;;  %v888_v59 = vmul.f32 %v887_v2, %v1185_v42 }
 0xb8e   :  { %1037 = vrsqrt.f32 %v258_v58  ;;  %v889_v61 = vsel %vm246_vm8, %v888_v59, 0.0 }
 0xb8f   :  { %890 = vadd.xlane.f32.xlu0 %v889_v61  ;;  %1039 = vrsqrt.f32 %v510_v62 }
 0xb98   :  { %v1038_v0 = vpop.eup %1037 }
 0xb99   :  { %v260_v1 = vmul.f32 %v1038_v0, %v148_v63  ;;  %v1040_v4 = vpop.eup %1039 }
 0xb9a   :  { %v512_v5 = vmul.f32 %v1040_v4, %v1201_v7  ;;  %v967_v7 = vld [vmem:[%s1344_s6 + $0x8] sm:$0x3]  ;;  %s1073_s6 = smov [#allocation2]  }
 0xb9b   :  { %263 = vperm.xlu1 %1027, %v260_v1   ;;  %s937_s7 = sshll.u32 %s1073_s6, 4  ;;  %s938_s7 = int_to_ptr.vmem [resolvable:$true] %s937_s7 }
 0xb9c   :  { %s1043_s15 = scalar_lea.vmem %s938_s7, 128  ;;  %p1048_p1 = scmp.lt.s32.totalorder %s938_s7, %s938_s7 }
 0xb9d   :  { %p1044_p0 = scmp.ne.s32.totalorder %s938_s7, %s1043_s15  ;;  %p1049_p2 = scmp.lt.s32.totalorder %s1043_s15, %s1043_s15 }
 0xb9f   :  { %269 = vperm.xlu1 %1027, %v149_v3   ;;  %p1050_p3 = por %p1049_p2, %p1048_p1 }
 0xba1   :  { %p1051_p4 = pnand %p1050_p3, %p1044_p0 }
 0xba5   :  { %515 = vperm.xlu0 %1028, %v512_v5  }
 0xba9   :  { %904 = vperm.xlu0 %1028, %v968_v6  }
 0xc1a   :  { %v264_v8 = vpop.permute.xlu1 %263 }
 0xc1b   :  { %v266_v13 = vmul.f32 %v264_v8, %v251_v46 }
 0xc1c   :  { %v891_v9 = vpop.xlane.xlu0 %890 }
 0xc1d   :  { %v892_v10 = vmul.f32 0.03125, %v891_v9 }
 0xc1e   :  { %v270_v12 = vpop.permute.xlu1 %269 }
 0xc1f   :  { %v893_v11 = vadd.f32 1e-05, %v892_v10  ;;  %v272_v16 = vadd.f32 %v270_v12, %v266_v13 }
 0xc21   :  { %1041 = vrsqrt.f32 %v893_v11  ;;  %v274_v19 = vmul.f32 0.1, %v272_v16  ;;  %vm273_vm15 = vcmp.ge.f32.partialorder %v272_v16, 0.0 }
 0xc23   :  { %v275_v25 = vsel %vm273_vm15, %v272_v16, %v274_v19 }
 0xc24   :  { %v516_v14 = vpop.permute.xlu0 %515  ;;  %v276_v26 = vmul.f32 %v275_v25, %v1185_v42 }
 0xc25   :  { %v518_v17 = vmul.f32 %v516_v14, %v503_v40 }
 0xc27   :  { %v519_v18 = vadd.f32 %v518_v17, %v1210_v15 }
 0xc28   :  { %v905_v30 = vpop.permute.xlu0 %904 }
 0xc29   :  { %vm520_vm14 = vcmp.ge.f32.partialorder %v519_v18, 0.0  ;;  %v521_v20 = vmul.f32 0.1, %v519_v18 }
 0xc2b   :  { %v1042_v21 = vpop.eup %1041  ;;  %v522_v22 = vsel %vm520_vm14, %v519_v18, %v521_v20 }
 0xc2c   :  { %v895_v23 = vmul.f32 %v1042_v21, %v967_v7  ;;  %v523_v24 = vmul.f32 %v522_v22, %v1185_v42 }
 0xc2e   :  { %898 = vperm.xlu1 %1027, %v895_v23   ;;  %525 = vrot.lane.b32.xlu0 %v523_v24, %s1072_s24 }
 0xc32   :  { %278 = vrot.lane.b32.xlu1 %v276_v26, %s1072_s24 }
 0xca0   :  { %v526_v39 = vpop.permute.xlu0 %525 }
 0xca1   :  { %v528_v37 = vsel %vm281_vm11, 0.0, %v526_v39 }
 0xca2   :  { %v529_v43 = vsel %vm283_vm12, %v528_v37, 0.0 }
 0xcad   :  { %v899_v15 = vpop.permute.xlu1 %898 }
 0xcae   :  { %v901_v27 = vmul.f32 %v899_v15, %v886_v55 }
 0xcb0   :  { %v907_v31 = vadd.f32 %v905_v30, %v901_v27 }
 0xcb1   :  { %v279_v36 = vpop.permute.xlu1 %278 }
 0xcb2   :  { %vm908_vm0 = vcmp.ge.f32.partialorder %v907_v31, 0.0  ;;  %v909_v32 = vmul.f32 0.1, %v907_v31  ;;  %v282_v38 = vsel %vm281_vm11, 0.0, %v279_v36 }
 0xcb3   :  { %v284_v40 = vsel %vm283_vm12, %v282_v38, 0.0 }
 0xcb4   :  { %v910_v33 = vsel %vm908_vm0, %v907_v31, %v909_v32  ;;  %v919_v41 = vrot.slane %v284_v40, 6 }
 0xcb5   :  { %v911_v35 = vmul.f32 %v910_v33, %v1185_v42  ;;  %v922_v42 = vrot.slane %v529_v43, 4 }
 0xcb6   :  { %v927_v45 = vsel %vm160_vm4, %v1145_v28, %v919_v41 }
 0xcb7   :  { %913 = vrot.lane.b32.xlu1 %v911_v35, %s1072_s24  ;;  %v928_v29 = vsel %vm162_vm5, %v927_v45, %v922_v42 }
 0xd29   :  { %v914_v44 = vpop.permute.xlu1 %913 }
 0xd2a   :  { %v916_v46 = vsel %vm281_vm11, 0.0, %v914_v44 }
 0xd2b   :  { %v917_v47 = vsel %vm283_vm12, %v916_v46, 0.0 }
 0xd2c   :  { %v925_v48 = vrot.slane %v917_v47, 2 }
 0xd2e   :  { %v929_v49 = vsel %vm168_vm6, %v928_v29, %v925_v48 }
 0xd2f   :  { %930 = vst.msk [vmem:[#allocation2] sm:$0xff] %vm116_vm2, %v929_v49 }
 0xd30   :  { %1054 = shalt.err (!%p1051_p4)
}
 0xd31   :  { %s1055_s18 = scalar_lea.hbm %s1346_s8, 128 }
 0xd32   :  { %p1056_p5 = scmp.ne.s32.totalorder %s1346_s8, %s1055_s18  ;;  %p1059_p6 = scmp.lt.u32.totalorder %s1055_s18, %s1346_s8 }
 0xd34   :  { %p1061_p7 = pnand %p1059_p6, %p1056_p5 }
 0xd36   :  { %1064 = shalt.err (!%p1061_p7)
}
 0xd37   :  { %940 = dma.vmem_to_hbm [thread:$0]  %s938_s7, 128, %s1346_s8, [#allocation3]  }
 0xd38   :  { %1065 = dma.done.wait [#allocation3], 128  }
 0xd39   :  { %1066 = vsyncadd [#allocation3], 4294967168 }
 0xd3a   :  { %944 = vsyncpa [#allocation3], 1 }

</bundles_post_ra>
